<compile_context>
chip_gen: v5e
topology: v5e:2x2
jax: 0.10.0
libtpu: 0.0.40
codegen_flags: <defaults>
</compile_context>

<pallas_src>
import functools

import jax
import jax.numpy as jnp
from jax.experimental import pallas as pl
from jax.experimental.pallas import tpu as pltpu


def _rnn_ae_kernel(x_ref, vecs_ref, mats_ref, out_ref, *, n, l, h):
    """Refs:
      x_ref    [N, L]    encoder input (channel dim squeezed; input_size == 1)
      vecs_ref [8, H]    row 0: w_ih1
                         row 1: b_ih1 + b_hh1
                         row 2: w_ih2 + b_ih2 + b_hh2   (decoder input is ones)
                         row 3: fc_w
                         row 4: fc_b / H  (per-lane share; lane-sum restores fc_b)
                         rows 5..7: zero padding (full sublane group)
      mats_ref [2H, H]   rows [0:H)  = W_hh1^T,  rows [H:2H) = W_hh2^T
      out_ref  [N, L]    sigmoid(fc(decoder hidden states))
    """
    # Static sublane slices of the packed matrix slab (zero-cost ref views).
    whh1t = mats_ref[0:h, :]                                  # [H, H]
    whh2t = mats_ref[h:2 * h, :]                              # [H, H]

    # Hoisted broadcasts (done once, reused across all unrolled steps).
    wih1 = jnp.broadcast_to(vecs_ref[0:1, :], (n, h))
    b1 = jnp.broadcast_to(vecs_ref[1:2, :], (n, h))
    const2 = jnp.broadcast_to(vecs_ref[2:3, :], (n, h))
    fcw = jnp.broadcast_to(vecs_ref[3:4, :], (n, h))
    fcb = jnp.broadcast_to(vecs_ref[4:5, :], (n, h))          # fc_b / H per lane

    x = x_ref[...]                                            # [N, L]

    # ---- encoder RNN (rnn1), h0 = 0; fully unrolled (L static) --------------
    hstate = jnp.zeros((n, h), jnp.float32)
    for t in range(l):
        xc_t = x[:, t:t + 1] * wih1 + b1                      # per-step VPU work
        hstate = jnp.tanh(xc_t + jnp.dot(hstate, whh1t,
                                         preferred_element_type=jnp.float32))

    # ---- decoder RNN (rnn2, ones input) + fused fc/sigmoid ------------------
    cols = []
    for t in range(l):
        hstate = jnp.tanh(const2 + jnp.dot(hstate, whh2t,
                                           preferred_element_type=jnp.float32))
        # fc folded per step: XLU lane-reduce -> [N, 1] logit column.
        cols.append(jnp.sum(hstate * fcw + fcb, axis=-1, keepdims=True))

    logits = jnp.concatenate(cols, axis=-1)                   # [N, L], vreg-resident
    out_ref[...] = jax.nn.sigmoid(logits)                     # single dense store


def pack_params(params):
    """Pack the 10 PyTorch-style params into two slabs (done once)."""
    H = params["w_hh1"].shape[0]
    f32 = jnp.float32
    vecs = jnp.zeros((8, H), f32)
    vecs = vecs.at[0].set(params["w_ih1"].reshape(H).astype(f32))
    vecs = vecs.at[1].set((params["b_ih1"] + params["b_hh1"]).astype(f32))
    vecs = vecs.at[2].set((params["w_ih2"].reshape(H)
                           + params["b_ih2"] + params["b_hh2"]).astype(f32))
    vecs = vecs.at[3].set(params["fc_w"].reshape(H).astype(f32))
    vecs = vecs.at[4].set(jnp.full((H,), params["fc_b"][0] / H, f32))
    mats = jnp.concatenate([params["w_hh1"].T.astype(f32),
                            params["w_hh2"].T.astype(f32)], axis=0)   # [2H, H]
    return vecs, mats


def rnn_autoencoder_forward(x, vecs, mats):
    """x: [N, L, 1] float32  ->  [N, L, 1] float32 (matches PyTorch forward)."""
    N, L, C = x.shape
    assert C == 1
    H = mats.shape[1]

    x2 = x[..., 0].astype(jnp.float32)                        # [N, L] (squeeze only)
    vmem = pl.BlockSpec(memory_space=pltpu.MemorySpace.VMEM)

    out = pl.pallas_call(
        functools.partial(_rnn_ae_kernel, n=N, l=L, h=H),
        out_shape=jax.ShapeDtypeStruct((N, L), jnp.float32),
        in_specs=[vmem, vmem, vmem],
        out_specs=vmem,
    )(x2, vecs, mats)

    return out[..., None]                                     # [N, L, 1]


def init_params(key, hidden_size):
    """Deterministic init, same shapes as the PyTorch module (uniform(+-1/sqrt(H)))."""
    H = hidden_size
    bound = 1.0 / float(H) ** 0.5
    ks = jax.random.split(key, 10)
    u = lambda k, s: jax.random.uniform(k, s, jnp.float32, -bound, bound)
    return {
        "w_ih1": u(ks[0], (H, 1)), "w_hh1": u(ks[1], (H, H)),
        "b_ih1": u(ks[2], (H,)),   "b_hh1": u(ks[3], (H,)),
        "w_ih2": u(ks[4], (H, 1)), "w_hh2": u(ks[5], (H, H)),
        "b_ih2": u(ks[6], (H,)),   "b_hh2": u(ks[7], (H,)),
        "fc_w":  u(ks[8], (1, H)), "fc_b":  u(ks[9], (1,)),
    }


def reference_forward(x, params):
    """Pure-JAX reference reproducing the PyTorch semantics exactly."""
    N, L, _ = x.shape
    H = params["w_hh1"].shape[0]
    h = jnp.zeros((N, H), jnp.float32)
    for t in range(L):
        h = jnp.tanh(x[:, t, :] @ params["w_ih1"].T + params["b_ih1"]
                     + h @ params["w_hh1"].T + params["b_hh1"])
    ones_in = jnp.ones((N, 1), jnp.float32)          # torch.ones(size=x.size())
    ys = []
    for t in range(L):
        h = jnp.tanh(ones_in @ params["w_ih2"].T + params["b_ih2"]
                     + h @ params["w_hh2"].T + params["b_hh2"])
        ys.append(jax.nn.sigmoid(h @ params["fc_w"].T + params["fc_b"]))
    return jnp.stack(ys, axis=1)                     # [N, L, 1]


if __name__ == "__main__":
    N, L, H = 2, 8, 32                               # small shapes: batch=2, seq=8, hidden=32
    key = jax.random.PRNGKey(0)
    pkey, xkey = jax.random.split(key)
    params = init_params(pkey, H)
    x = jax.random.normal(xkey, (N, L, 1), jnp.float32)

    vecs, mats = pack_params(params)                 # param packing happens once
    out = jax.block_until_ready(rnn_autoencoder_forward(x, vecs, mats))
    ref = reference_forward(x, params)

    assert out.shape == (N, L, 1), out.shape
    max_err = float(jnp.max(jnp.abs(out - ref)))
    assert max_err < 1e-4, f"mismatch vs reference: {max_err}"
    print("KERNEL_OK")
</pallas_src>

<mosaic_0001>
module attributes {stable_mosaic.version = 11 : i64} {
  func.func @_rnn_ae_kernel(%arg0: memref<2x8xf32, #tpu.memory_space<vmem>>, %arg1: memref<8x32xf32, #tpu.memory_space<vmem>>, %arg2: memref<64x32xf32, #tpu.memory_space<vmem>>, %arg3: memref<2x8xf32, #tpu.memory_space<vmem>>) attributes {dimension_semantics = [], scalar_prefetch = 0 : i64, scratch_operands = 0 : i64, tpu.core_type = #tpu.core_type<tc>} {
    %c0 = arith.constant 0 : index
    %c0_0 = arith.constant 0 : index
    %0 = vector.load %arg2[%c0, %c0_0] : memref<64x32xf32, #tpu.memory_space<vmem>>, vector<32x32xf32>
    %c32 = arith.constant 32 : index
    %c0_1 = arith.constant 0 : index
    %1 = vector.load %arg2[%c32, %c0_1] : memref<64x32xf32, #tpu.memory_space<vmem>>, vector<32x32xf32>
    %c0_2 = arith.constant 0 : index
    %c0_3 = arith.constant 0 : index
    %2 = vector.load %arg1[%c0_2, %c0_3] : memref<8x32xf32, #tpu.memory_space<vmem>>, vector<1x32xf32>
    %3 = vector.shape_cast %2 : vector<1x32xf32> to vector<1x32xf32>
    %4 = vector.broadcast %3 : vector<1x32xf32> to vector<2x32xf32>
    %c1 = arith.constant 1 : index
    %c0_4 = arith.constant 0 : index
    %5 = vector.load %arg1[%c1, %c0_4] : memref<8x32xf32, #tpu.memory_space<vmem>>, vector<1x32xf32>
    %6 = vector.shape_cast %5 : vector<1x32xf32> to vector<1x32xf32>
    %7 = vector.broadcast %6 : vector<1x32xf32> to vector<2x32xf32>
    %c2 = arith.constant 2 : index
    %c0_5 = arith.constant 0 : index
    %8 = vector.load %arg1[%c2, %c0_5] : memref<8x32xf32, #tpu.memory_space<vmem>>, vector<1x32xf32>
    %9 = vector.shape_cast %8 : vector<1x32xf32> to vector<1x32xf32>
    %10 = vector.broadcast %9 : vector<1x32xf32> to vector<2x32xf32>
    %c3 = arith.constant 3 : index
    %c0_6 = arith.constant 0 : index
    %11 = vector.load %arg1[%c3, %c0_6] : memref<8x32xf32, #tpu.memory_space<vmem>>, vector<1x32xf32>
    %12 = vector.shape_cast %11 : vector<1x32xf32> to vector<1x32xf32>
    %13 = vector.broadcast %12 : vector<1x32xf32> to vector<2x32xf32>
    %c4 = arith.constant 4 : index
    %c0_7 = arith.constant 0 : index
    %14 = vector.load %arg1[%c4, %c0_7] : memref<8x32xf32, #tpu.memory_space<vmem>>, vector<1x32xf32>
    %15 = vector.shape_cast %14 : vector<1x32xf32> to vector<1x32xf32>
    %16 = vector.broadcast %15 : vector<1x32xf32> to vector<2x32xf32>
    %c0_8 = arith.constant 0 : index
    %c0_9 = arith.constant 0 : index
    %17 = vector.load %arg0[%c0_8, %c0_9] : memref<2x8xf32, #tpu.memory_space<vmem>>, vector<2x8xf32>
    %cst = arith.constant 0.000000e+00 : f32
    %18 = vector.broadcast %cst : f32 to vector<2x32xf32>
    %19 = vector.extract_strided_slice %17 {offsets = [0, 0], sizes = [2, 1], strides = [1, 1]} : vector<2x8xf32> to vector<2x1xf32>
    %20 = vector.broadcast %19 : vector<2x1xf32> to vector<2x32xf32>
    %21 = arith.mulf %20, %4 : vector<2x32xf32>
    %22 = arith.addf %21, %7 : vector<2x32xf32>
    %cst_10 = arith.constant dense<0.000000e+00> : vector<2x32xf32>
    %23 = tpu.matmul %18, %0, %cst_10 {dimension_numbers = #tpu.dot_dimension_numbers<[1], [0], [0], [1], [0, 0, 1, 1], [], []>} : vector<2x32xf32>, vector<32x32xf32>, vector<2x32xf32> -> vector<2x32xf32>
    %24 = arith.addf %22, %23 : vector<2x32xf32>
    %25 = math.tanh %24 : vector<2x32xf32>
    %26 = vector.extract_strided_slice %17 {offsets = [0, 1], sizes = [2, 1], strides = [1, 1]} : vector<2x8xf32> to vector<2x1xf32>
    %27 = vector.broadcast %26 : vector<2x1xf32> to vector<2x32xf32>
    %28 = arith.mulf %27, %4 : vector<2x32xf32>
    %29 = arith.addf %28, %7 : vector<2x32xf32>
    %cst_11 = arith.constant dense<0.000000e+00> : vector<2x32xf32>
    %30 = tpu.matmul %25, %0, %cst_11 {dimension_numbers = #tpu.dot_dimension_numbers<[1], [0], [0], [1], [0, 0, 1, 1], [], []>} : vector<2x32xf32>, vector<32x32xf32>, vector<2x32xf32> -> vector<2x32xf32>
    %31 = arith.addf %29, %30 : vector<2x32xf32>
    %32 = math.tanh %31 : vector<2x32xf32>
    %33 = vector.extract_strided_slice %17 {offsets = [0, 2], sizes = [2, 1], strides = [1, 1]} : vector<2x8xf32> to vector<2x1xf32>
    %34 = vector.broadcast %33 : vector<2x1xf32> to vector<2x32xf32>
    %35 = arith.mulf %34, %4 : vector<2x32xf32>
    %36 = arith.addf %35, %7 : vector<2x32xf32>
    %cst_12 = arith.constant dense<0.000000e+00> : vector<2x32xf32>
    %37 = tpu.matmul %32, %0, %cst_12 {dimension_numbers = #tpu.dot_dimension_numbers<[1], [0], [0], [1], [0, 0, 1, 1], [], []>} : vector<2x32xf32>, vector<32x32xf32>, vector<2x32xf32> -> vector<2x32xf32>
    %38 = arith.addf %36, %37 : vector<2x32xf32>
    %39 = math.tanh %38 : vector<2x32xf32>
    %40 = vector.extract_strided_slice %17 {offsets = [0, 3], sizes = [2, 1], strides = [1, 1]} : vector<2x8xf32> to vector<2x1xf32>
    %41 = vector.broadcast %40 : vector<2x1xf32> to vector<2x32xf32>
    %42 = arith.mulf %41, %4 : vector<2x32xf32>
    %43 = arith.addf %42, %7 : vector<2x32xf32>
    %cst_13 = arith.constant dense<0.000000e+00> : vector<2x32xf32>
    %44 = tpu.matmul %39, %0, %cst_13 {dimension_numbers = #tpu.dot_dimension_numbers<[1], [0], [0], [1], [0, 0, 1, 1], [], []>} : vector<2x32xf32>, vector<32x32xf32>, vector<2x32xf32> -> vector<2x32xf32>
    %45 = arith.addf %43, %44 : vector<2x32xf32>
    %46 = math.tanh %45 : vector<2x32xf32>
    %47 = vector.extract_strided_slice %17 {offsets = [0, 4], sizes = [2, 1], strides = [1, 1]} : vector<2x8xf32> to vector<2x1xf32>
    %48 = vector.broadcast %47 : vector<2x1xf32> to vector<2x32xf32>
    %49 = arith.mulf %48, %4 : vector<2x32xf32>
    %50 = arith.addf %49, %7 : vector<2x32xf32>
    %cst_14 = arith.constant dense<0.000000e+00> : vector<2x32xf32>
    %51 = tpu.matmul %46, %0, %cst_14 {dimension_numbers = #tpu.dot_dimension_numbers<[1], [0], [0], [1], [0, 0, 1, 1], [], []>} : vector<2x32xf32>, vector<32x32xf32>, vector<2x32xf32> -> vector<2x32xf32>
    %52 = arith.addf %50, %51 : vector<2x32xf32>
    %53 = math.tanh %52 : vector<2x32xf32>
    %54 = vector.extract_strided_slice %17 {offsets = [0, 5], sizes = [2, 1], strides = [1, 1]} : vector<2x8xf32> to vector<2x1xf32>
    %55 = vector.broadcast %54 : vector<2x1xf32> to vector<2x32xf32>
    %56 = arith.mulf %55, %4 : vector<2x32xf32>
    %57 = arith.addf %56, %7 : vector<2x32xf32>
    %cst_15 = arith.constant dense<0.000000e+00> : vector<2x32xf32>
    %58 = tpu.matmul %53, %0, %cst_15 {dimension_numbers = #tpu.dot_dimension_numbers<[1], [0], [0], [1], [0, 0, 1, 1], [], []>} : vector<2x32xf32>, vector<32x32xf32>, vector<2x32xf32> -> vector<2x32xf32>
    %59 = arith.addf %57, %58 : vector<2x32xf32>
    %60 = math.tanh %59 : vector<2x32xf32>
    %61 = vector.extract_strided_slice %17 {offsets = [0, 6], sizes = [2, 1], strides = [1, 1]} : vector<2x8xf32> to vector<2x1xf32>
    %62 = vector.broadcast %61 : vector<2x1xf32> to vector<2x32xf32>
    %63 = arith.mulf %62, %4 : vector<2x32xf32>
    %64 = arith.addf %63, %7 : vector<2x32xf32>
    %cst_16 = arith.constant dense<0.000000e+00> : vector<2x32xf32>
    %65 = tpu.matmul %60, %0, %cst_16 {dimension_numbers = #tpu.dot_dimension_numbers<[1], [0], [0], [1], [0, 0, 1, 1], [], []>} : vector<2x32xf32>, vector<32x32xf32>, vector<2x32xf32> -> vector<2x32xf32>
    %66 = arith.addf %64, %65 : vector<2x32xf32>
    %67 = math.tanh %66 : vector<2x32xf32>
    %68 = vector.extract_strided_slice %17 {offsets = [0, 7], sizes = [2, 1], strides = [1, 1]} : vector<2x8xf32> to vector<2x1xf32>
    %69 = vector.broadcast %68 : vector<2x1xf32> to vector<2x32xf32>
    %70 = arith.mulf %69, %4 : vector<2x32xf32>
    %71 = arith.addf %70, %7 : vector<2x32xf32>
    %cst_17 = arith.constant dense<0.000000e+00> : vector<2x32xf32>
    %72 = tpu.matmul %67, %0, %cst_17 {dimension_numbers = #tpu.dot_dimension_numbers<[1], [0], [0], [1], [0, 0, 1, 1], [], []>} : vector<2x32xf32>, vector<32x32xf32>, vector<2x32xf32> -> vector<2x32xf32>
    %73 = arith.addf %71, %72 : vector<2x32xf32>
    %74 = math.tanh %73 : vector<2x32xf32>
    %cst_18 = arith.constant dense<0.000000e+00> : vector<2x32xf32>
    %75 = tpu.matmul %74, %1, %cst_18 {dimension_numbers = #tpu.dot_dimension_numbers<[1], [0], [0], [1], [0, 0, 1, 1], [], []>} : vector<2x32xf32>, vector<32x32xf32>, vector<2x32xf32> -> vector<2x32xf32>
    %76 = arith.addf %10, %75 : vector<2x32xf32>
    %77 = math.tanh %76 : vector<2x32xf32>
    %78 = arith.mulf %77, %13 : vector<2x32xf32>
    %79 = arith.addf %78, %16 : vector<2x32xf32>
    %cst_19 = arith.constant dense<0.000000e+00> : vector<2xf32>
    %80 = vector.multi_reduction <add>, %79, %cst_19 [1] : vector<2x32xf32> to vector<2xf32>
    %81 = vector.shape_cast %80 : vector<2xf32> to vector<2x1xf32>
    %cst_20 = arith.constant dense<0.000000e+00> : vector<2x32xf32>
    %82 = tpu.matmul %77, %1, %cst_20 {dimension_numbers = #tpu.dot_dimension_numbers<[1], [0], [0], [1], [0, 0, 1, 1], [], []>} : vector<2x32xf32>, vector<32x32xf32>, vector<2x32xf32> -> vector<2x32xf32>
    %83 = arith.addf %10, %82 : vector<2x32xf32>
    %84 = math.tanh %83 : vector<2x32xf32>
    %85 = arith.mulf %84, %13 : vector<2x32xf32>
    %86 = arith.addf %85, %16 : vector<2x32xf32>
    %cst_21 = arith.constant dense<0.000000e+00> : vector<2xf32>
    %87 = vector.multi_reduction <add>, %86, %cst_21 [1] : vector<2x32xf32> to vector<2xf32>
    %88 = vector.shape_cast %87 : vector<2xf32> to vector<2x1xf32>
    %cst_22 = arith.constant dense<0.000000e+00> : vector<2x32xf32>
    %89 = tpu.matmul %84, %1, %cst_22 {dimension_numbers = #tpu.dot_dimension_numbers<[1], [0], [0], [1], [0, 0, 1, 1], [], []>} : vector<2x32xf32>, vector<32x32xf32>, vector<2x32xf32> -> vector<2x32xf32>
    %90 = arith.addf %10, %89 : vector<2x32xf32>
    %91 = math.tanh %90 : vector<2x32xf32>
    %92 = arith.mulf %91, %13 : vector<2x32xf32>
    %93 = arith.addf %92, %16 : vector<2x32xf32>
    %cst_23 = arith.constant dense<0.000000e+00> : vector<2xf32>
    %94 = vector.multi_reduction <add>, %93, %cst_23 [1] : vector<2x32xf32> to vector<2xf32>
    %95 = vector.shape_cast %94 : vector<2xf32> to vector<2x1xf32>
    %cst_24 = arith.constant dense<0.000000e+00> : vector<2x32xf32>
    %96 = tpu.matmul %91, %1, %cst_24 {dimension_numbers = #tpu.dot_dimension_numbers<[1], [0], [0], [1], [0, 0, 1, 1], [], []>} : vector<2x32xf32>, vector<32x32xf32>, vector<2x32xf32> -> vector<2x32xf32>
    %97 = arith.addf %10, %96 : vector<2x32xf32>
    %98 = math.tanh %97 : vector<2x32xf32>
    %99 = arith.mulf %98, %13 : vector<2x32xf32>
    %100 = arith.addf %99, %16 : vector<2x32xf32>
    %cst_25 = arith.constant dense<0.000000e+00> : vector<2xf32>
    %101 = vector.multi_reduction <add>, %100, %cst_25 [1] : vector<2x32xf32> to vector<2xf32>
    %102 = vector.shape_cast %101 : vector<2xf32> to vector<2x1xf32>
    %cst_26 = arith.constant dense<0.000000e+00> : vector<2x32xf32>
    %103 = tpu.matmul %98, %1, %cst_26 {dimension_numbers = #tpu.dot_dimension_numbers<[1], [0], [0], [1], [0, 0, 1, 1], [], []>} : vector<2x32xf32>, vector<32x32xf32>, vector<2x32xf32> -> vector<2x32xf32>
    %104 = arith.addf %10, %103 : vector<2x32xf32>
    %105 = math.tanh %104 : vector<2x32xf32>
    %106 = arith.mulf %105, %13 : vector<2x32xf32>
    %107 = arith.addf %106, %16 : vector<2x32xf32>
    %cst_27 = arith.constant dense<0.000000e+00> : vector<2xf32>
    %108 = vector.multi_reduction <add>, %107, %cst_27 [1] : vector<2x32xf32> to vector<2xf32>
    %109 = vector.shape_cast %108 : vector<2xf32> to vector<2x1xf32>
    %cst_28 = arith.constant dense<0.000000e+00> : vector<2x32xf32>
    %110 = tpu.matmul %105, %1, %cst_28 {dimension_numbers = #tpu.dot_dimension_numbers<[1], [0], [0], [1], [0, 0, 1, 1], [], []>} : vector<2x32xf32>, vector<32x32xf32>, vector<2x32xf32> -> vector<2x32xf32>
    %111 = arith.addf %10, %110 : vector<2x32xf32>
    %112 = math.tanh %111 : vector<2x32xf32>
    %113 = arith.mulf %112, %13 : vector<2x32xf32>
    %114 = arith.addf %113, %16 : vector<2x32xf32>
    %cst_29 = arith.constant dense<0.000000e+00> : vector<2xf32>
    %115 = vector.multi_reduction <add>, %114, %cst_29 [1] : vector<2x32xf32> to vector<2xf32>
    %116 = vector.shape_cast %115 : vector<2xf32> to vector<2x1xf32>
    %cst_30 = arith.constant dense<0.000000e+00> : vector<2x32xf32>
    %117 = tpu.matmul %112, %1, %cst_30 {dimension_numbers = #tpu.dot_dimension_numbers<[1], [0], [0], [1], [0, 0, 1, 1], [], []>} : vector<2x32xf32>, vector<32x32xf32>, vector<2x32xf32> -> vector<2x32xf32>
    %118 = arith.addf %10, %117 : vector<2x32xf32>
    %119 = math.tanh %118 : vector<2x32xf32>
    %120 = arith.mulf %119, %13 : vector<2x32xf32>
    %121 = arith.addf %120, %16 : vector<2x32xf32>
    %cst_31 = arith.constant dense<0.000000e+00> : vector<2xf32>
    %122 = vector.multi_reduction <add>, %121, %cst_31 [1] : vector<2x32xf32> to vector<2xf32>
    %123 = vector.shape_cast %122 : vector<2xf32> to vector<2x1xf32>
    %cst_32 = arith.constant dense<0.000000e+00> : vector<2x32xf32>
    %124 = tpu.matmul %119, %1, %cst_32 {dimension_numbers = #tpu.dot_dimension_numbers<[1], [0], [0], [1], [0, 0, 1, 1], [], []>} : vector<2x32xf32>, vector<32x32xf32>, vector<2x32xf32> -> vector<2x32xf32>
    %125 = arith.addf %10, %124 : vector<2x32xf32>
    %126 = math.tanh %125 : vector<2x32xf32>
    %127 = arith.mulf %126, %13 : vector<2x32xf32>
    %128 = arith.addf %127, %16 : vector<2x32xf32>
    %cst_33 = arith.constant dense<0.000000e+00> : vector<2xf32>
    %129 = vector.multi_reduction <add>, %128, %cst_33 [1] : vector<2x32xf32> to vector<2xf32>
    %130 = vector.shape_cast %129 : vector<2xf32> to vector<2x1xf32>
    %131 = tpu.concatenate %81, %88, %95, %102, %109, %116, %123, %130 in 1 : vector<2x1xf32>, vector<2x1xf32>, vector<2x1xf32>, vector<2x1xf32>, vector<2x1xf32>, vector<2x1xf32>, vector<2x1xf32>, vector<2x1xf32> -> vector<2x8xf32>
    %132 = arith.negf %131 : vector<2x8xf32>
    %133 = math.exp %132 : vector<2x8xf32>
    %cst_34 = arith.constant 1.000000e+00 : f32
    %134 = vector.broadcast %cst_34 : f32 to vector<2x8xf32>
    %135 = arith.addf %134, %133 : vector<2x8xf32>
    %136 = arith.divf %134, %135 : vector<2x8xf32>
    %c0_35 = arith.constant 0 : index
    %c0_36 = arith.constant 0 : index
    %137 = vector.load %arg3[%c0_35, %c0_36] : memref<2x8xf32, #tpu.memory_space<vmem>>, vector<2x8xf32>
    tpu.vector_store %arg3[%c0_35, %c0_36], %136 {strides = array<i32>} : memref<2x8xf32, #tpu.memory_space<vmem>>, vector<2x8xf32>,
    return
  }
}

</mosaic_0001>

<bundles_post_ra>
// kernel: tpu_custom_call.1
= control target key start
LH: loop header
LB: loop body
LE: loop exit
PB: predicated region body
PF: predicated region fallthrough
CT: control target
= control target key end

     0   :  { %v678_v3 = vmov 0   ;;  %s836_s0 = inlined_call_operand.vmem [shape: f32[2,8], index: 0, kind: input, shape index: {}]   ;;  %s837_s1 = inlined_call_operand.vmem [shape: f32[8,32], index: 1, kind: input, shape index: {}]   ;;  %s838_s2 = inlined_call_operand.vmem [shape: f32[64,32], index: 2, kind: input, shape index: {}]   ;;  %s839_s3 = inlined_call_operand.hbm [shape: f32[2,8], index: 3, kind: output, shape index: {}]  }
   0x1   :  { %v18_v0 = vld [vmem:[%s838_s2 + $0x18] sm:$0xff]  ;;  %v17_v1 = vld [vmem:[%s838_s2 + $0x10] sm:$0xff]  ;;  %v16_v2 = vld [vmem:[%s838_s2 + $0x8] sm:$0xff]  ;;  %602 = vset.pattern.permute.xlu0 %v678_v3 }
   0x2   :  { %57 = vmatpush.msra.mxu0 %v18_v0  ;;  %v720_v4 = vld [vmem:[%s836_s0] sm:$0x3]  ;;  %88 = vmatpush.msra.mxu1 %v18_v0 }
   0x3   :  { %36 = vperm.xlu0 %602, %v720_v4   ;;  %119 = vmatpush.msra.mxu2 %v18_v0 }
   0x4   :  { %58 = vmatpush.msra.mxu0 %v17_v1 }
   0x5   :  { %8 = vsyncpa [#allocation3], 0  ;;  %v15_v5 = vld [vmem:[%s838_s2] sm:$0xff]  ;;  %89 = vmatpush.msra.mxu1 %v17_v1  ;;  %150 = vmatpush.msra.mxu3 %v18_v0  ;;  %v679_v6 = vmov 0.0   ;;  %v680_v7 = vmov 1   ;;  %vm41_vm0 = vcmask 261120  }
   0x6   :  { %59 = vmatpush.msra.mxu0 %v16_v2  ;;  %120 = vmatpush.msra.mxu2 %v17_v1  ;;  %v730_v8 = vld [vmem:[%s837_s1] ss:$0 sm:$0xff]  ;;  %v736_v11 = vld [vmem:[%s837_s1 + $0x1] ss:$0 sm:$0xff]  ;;  %v681_v16 = vmov 2   ;;  %v682_v23 = vmov 3  }
   0x7   :  { %90 = vmatpush.msra.mxu1 %v16_v2  ;;  %151 = vmatpush.msra.mxu3 %v17_v1  ;;  %v683_v30 = vmov 4   ;;  %v684_v37 = vmov 5   ;;  %v685_v44 = vmov 6   ;;  %v686_v51 = vmov 7   ;;  %v22_v58 = vld [vmem:[%s838_s2 + $0x38] sm:$0xff]  ;;  %v21_v59 = vld [vmem:[%s838_s2 + $0x30] sm:$0xff] }
   0x8   :  { %60 = vmatpush.msra.mxu0 %v15_v5  ;;  %121 = vmatpush.msra.mxu2 %v16_v2  ;;  %v20_v60 = vld [vmem:[%s838_s2 + $0x28] sm:$0xff]  ;;  %v19_v61 = vld [vmem:[%s838_s2 + $0x20] sm:$0xff]  ;;  %vm311_vm1 = vcmask 254976   ;;  %vm525_vm2 = vcmask 7168   ;;  %vm527_vm3 = vcmask 15360   ;;  %vm529_vm4 = vcmask 23552  }
   0x9   :  { %61 = vmatmul.f32.vlgmr.msra.gmra.mxu0 %v679_v6  ;;  %91 = vmatpush.msra.mxu1 %v15_v5  ;;  %vm531_vm5 = vcmask 31744   ;;  %vm533_vm6 = vcmask 39936   ;;  %vm535_vm7 = vcmask 48128   ;;  %vm537_vm8 = vcmask 56320   ;;  %s567_s14 = sshll.u32 %s839_s3, 4  ;;  %s568_s14 = int_to_ptr.hbm [resolvable:$true] %s567_s14 }
   0xa   :  { %122 = vmatpush.msra.mxu2 %v15_v5  ;;  %152 = vmatpush.msra.mxu3 %v16_v2  ;;  %vm558_vm12 = vcmask 58368  }
   0xb   :  { %181 = vmatpush.msrb.mxu0 %v18_v0  ;;  %212 = vmatpush.msrb.mxu1 %v18_v0 }
   0xc   :  { %153 = vmatpush.msra.mxu3 %v15_v5  ;;  %243 = vmatpush.msrb.mxu2 %v18_v0 }
   0xd   :  { %182 = vmatpush.msrb.mxu0 %v17_v1  ;;  %213 = vmatpush.msrb.mxu1 %v17_v1 }
   0xe   :  { %244 = vmatpush.msrb.mxu2 %v17_v1  ;;  %274 = vmatpush.msrb.mxu3 %v18_v0 }
   0xf   :  { %183 = vmatpush.msrb.mxu0 %v16_v2  ;;  %214 = vmatpush.msrb.mxu1 %v16_v2 }
  0x10   :  { %245 = vmatpush.msrb.mxu2 %v16_v2  ;;  %275 = vmatpush.msrb.mxu3 %v17_v1 }
  0x11   :  { %184 = vmatpush.msrb.mxu0 %v15_v5  ;;  %215 = vmatpush.msrb.mxu1 %v15_v5 }
  0x12   :  { %246 = vmatpush.msrb.mxu2 %v15_v5  ;;  %276 = vmatpush.msrb.mxu3 %v16_v2 }
  0x13   :  { %603 = vset.pattern.permute.xlu0 %v680_v7  ;;  %604 = vset.pattern.permute.xlu1 %v681_v16  ;;  %v788_v7 = vld [vmem:[%s837_s1 + $0x3] ss:$0 sm:$0xff] }
  0x14   :  { %277 = vmatpush.msrb.mxu3 %v15_v5  ;;  %68 = vperm.xlu0 %603, %v720_v4  }
  0x15   :  { %99 = vperm.xlu1 %604, %v720_v4   ;;  %606 = vset.pattern.permute.xlu2 %v683_v30 }
  0x16   :  { %161 = vperm.xlu2 %606, %v720_v4   ;;  %299 = vmatpush.msra.mxu0 %v22_v58 }
  0x18   :  { %300 = vmatpush.msra.mxu0 %v21_v59 }
  0x1a   :  { %301 = vmatpush.msra.mxu0 %v20_v60 }
  0x1c   :  { %610 = vset.pattern.permute.xlu0 %v686_v51  ;;  %302 = vmatpush.msra.mxu0 %v19_v61 }
  0x1d   :  { %605 = vset.pattern.permute.xlu1 %v682_v23 }
  0x1e   :  { %130 = vperm.xlu1 %605, %v720_v4   ;;  %607 = vset.pattern.permute.xlu2 %v684_v37 }
  0x1f   :  { %192 = vperm.xlu2 %607, %v720_v4  }
  0x26   :  { %608 = vset.pattern.permute.xlu1 %v685_v44 }
  0x27   :  { %223 = vperm.xlu1 %608, %v720_v4   ;;  %609 = vset.pattern.permute.xlu2 %v686_v51 }
  0x28   :  { %254 = vperm.xlu2 %609, %v720_v4   ;;  %v782_v4 = vld [vmem:[%s837_s1 + $0x2] ss:$0 sm:$0xff] }
  0x70   :  { %v162_v38 = vpop.permute.xlu2 %161 }
  0x71   :  { %v164_v39 = vmul.f32 %v730_v8, %v162_v38 }
  0x73   :  { %v165_v40 = vadd.f32 %v736_v11, %v164_v39 }
  0x75   :  { %v37_v9 = vpop.permute.xlu0 %36 }
  0x76   :  { %v39_v10 = vmul.f32 %v730_v8, %v37_v9 }
  0x78   :  { %v40_v12 = vadd.f32 %v736_v11, %v39_v10 }
  0x79   :  { %v193_v45 = vpop.permute.xlu2 %192 }
  0x7a   :  { %v195_v46 = vmul.f32 %v730_v8, %v193_v45 }
  0x7c   :  { %v196_v47 = vadd.f32 %v736_v11, %v195_v46 }
  0x82   :  { %v255_v62 = vpop.permute.xlu2 %254 }
  0x83   :  { %v257_v63 = vmul.f32 %v730_v8, %v255_v62 }
  0x85   :  { %v258_v0 = vadd.f32 %v736_v11, %v257_v63 }
  0x86   :  { %v62_v13 = vpop.f32.mrf.mxu0  ;;  %v69_v17 = vpop.permute.xlu0 %68 }
  0x87   :  { %v65_v14 = vadd.f32 %v62_v13, %v40_v12  ;;  %v71_v18 = vmul.f32 %v730_v8, %v69_v17  ;;  %v100_v24 = vpop.permute.xlu1 %99 }
  0x88   :  { %v102_v25 = vmul.f32 %v730_v8, %v100_v24 }
  0x89   :  { %616 = vtanh.f32 %v65_v14  ;;  %v72_v19 = vadd.f32 %v736_v11, %v71_v18 }
  0x8a   :  { %v103_v26 = vadd.f32 %v736_v11, %v102_v25 }
  0x8f   :  { %v617_v15 = vpop.eup %616 }
  0x90   :  { %576 = vmatmul.msk.f32.vlgmr.msra.gmra.mxu1 %vm41_vm0, %v617_v15  ;;  %v131_v31 = vpop.permute.xlu1 %130 }
  0x91   :  { %v133_v32 = vmul.f32 %v730_v8, %v131_v31  ;;  %330 = vmatpush.msra.mxu1 %v22_v58 }
  0x93   :  { %v134_v33 = vadd.f32 %v736_v11, %v133_v32  ;;  %331 = vmatpush.msra.mxu1 %v21_v59 }
  0x95   :  { %332 = vmatpush.msra.mxu1 %v20_v60 }
  0x97   :  { %333 = vmatpush.msra.mxu1 %v19_v61 }
  0x99   :  { %v224_v52 = vpop.permute.xlu1 %223 }
  0x9a   :  { %v226_v53 = vmul.f32 %v730_v8, %v224_v52  ;;  %v793_v8 = vld [vmem:[%s837_s1 + $0x4] ss:$0 sm:$0xff]  ;;  %s687_s1 = smov [#allocation2]  }
  0x9b   :  { %s565_s11 = sshll.u32 %s687_s1, 4  ;;  %s566_s11 = int_to_ptr.vmem [resolvable:$true] %s565_s11 }
  0x9c   :  { %v227_v54 = vadd.f32 %v736_v11, %v226_v53 }
 0x10d   :  { %v93_v20 = vpop.f32.mrf.mxu1 }
 0x10e   :  { %v96_v21 = vadd.f32 %v93_v20, %v72_v19 }
 0x110   :  { %618 = vtanh.f32 %v96_v21 }
 0x116   :  { %v619_v22 = vpop.eup %618 }
 0x117   :  { %577 = vmatmul.msk.f32.vlgmr.msra.gmra.mxu2 %vm41_vm0, %v619_v22 }
 0x118   :  { %360 = vmatpush.msra.mxu2 %v22_v58 }
 0x11a   :  { %361 = vmatpush.msra.mxu2 %v21_v59 }
 0x11c   :  { %362 = vmatpush.msra.mxu2 %v20_v60 }
 0x11e   :  { %363 = vmatpush.msra.mxu2 %v19_v61 }
 0x19a   :  { %v124_v27 = vpop.f32.mrf.mxu2 }
 0x19b   :  { %v127_v28 = vadd.f32 %v124_v27, %v103_v26 }
 0x19d   :  { %620 = vtanh.f32 %v127_v28 }
 0x1a3   :  { %v621_v29 = vpop.eup %620 }
 0x1a4   :  { %578 = vmatmul.msk.f32.vlgmr.msra.gmra.mxu3 %vm41_vm0, %v621_v29 }
 0x1a5   :  { %390 = vmatpush.msra.mxu3 %v22_v58 }
 0x1a7   :  { %391 = vmatpush.msra.mxu3 %v21_v59 }
 0x1a9   :  { %392 = vmatpush.msra.mxu3 %v20_v60 }
 0x1ab   :  { %393 = vmatpush.msra.mxu3 %v19_v61 }
 0x227   :  { %v155_v34 = vpop.f32.mrf.mxu3 }
 0x228   :  { %v158_v35 = vadd.f32 %v155_v34, %v134_v33 }
 0x22a   :  { %622 = vtanh.f32 %v158_v35 }
 0x230   :  { %v623_v36 = vpop.eup %622 }
 0x231   :  { %579 = vmatmul.msk.f32.vlgmr.msrb.gmra.mxu0 %vm41_vm0, %v623_v36 }
 0x232   :  { %420 = vmatpush.msrb.mxu0 %v22_v58 }
 0x234   :  { %421 = vmatpush.msrb.mxu0 %v21_v59 }
 0x236   :  { %422 = vmatpush.msrb.mxu0 %v20_v60 }
 0x238   :  { %423 = vmatpush.msrb.mxu0 %v19_v61 }
 0x2ae   :  { %v186_v41 = vpop.f32.mrf.mxu0 }
 0x2af   :  { %v189_v42 = vadd.f32 %v186_v41, %v165_v40 }
 0x2b1   :  { %624 = vtanh.f32 %v189_v42 }
 0x2b7   :  { %v625_v43 = vpop.eup %624 }
 0x2b8   :  { %580 = vmatmul.msk.f32.vlgmr.msrb.gmra.mxu1 %vm41_vm0, %v625_v43 }
 0x2b9   :  { %450 = vmatpush.msrb.mxu1 %v22_v58 }
 0x2bb   :  { %451 = vmatpush.msrb.mxu1 %v21_v59 }
 0x2bd   :  { %452 = vmatpush.msrb.mxu1 %v20_v60 }
 0x2bf   :  { %453 = vmatpush.msrb.mxu1 %v19_v61 }
 0x335   :  { %v217_v48 = vpop.f32.mrf.mxu1 }
 0x336   :  { %v220_v49 = vadd.f32 %v217_v48, %v196_v47 }
 0x338   :  { %626 = vtanh.f32 %v220_v49 }
 0x33e   :  { %v627_v50 = vpop.eup %626 }
 0x33f   :  { %581 = vmatmul.msk.f32.vlgmr.msrb.gmra.mxu2 %vm41_vm0, %v627_v50 }
 0x340   :  { %480 = vmatpush.msrb.mxu2 %v22_v58 }
 0x342   :  { %481 = vmatpush.msrb.mxu2 %v21_v59 }
 0x344   :  { %482 = vmatpush.msrb.mxu2 %v20_v60 }
 0x346   :  { %483 = vmatpush.msrb.mxu2 %v19_v61 }
 0x3c2   :  { %v248_v55 = vpop.f32.mrf.mxu2 }
 0x3c3   :  { %v251_v56 = vadd.f32 %v248_v55, %v227_v54 }
 0x3c5   :  { %628 = vtanh.f32 %v251_v56 }
 0x3cb   :  { %v629_v57 = vpop.eup %628 }
 0x3cc   :  { %582 = vmatmul.msk.f32.vlgmr.msrb.gmra.mxu3 %vm41_vm0, %v629_v57 }
 0x3cd   :  { %510 = vmatpush.msrb.mxu3 %v22_v58 }
 0x3cf   :  { %511 = vmatpush.msrb.mxu3 %v21_v59 }
 0x3d1   :  { %512 = vmatpush.msrb.mxu3 %v20_v60 }
 0x3d3   :  { %513 = vmatpush.msrb.mxu3 %v19_v61 }
 0x44f   :  { %v279_v1 = vpop.f32.mrf.mxu3 }
 0x450   :  { %v282_v2 = vadd.f32 %v279_v1, %v258_v0 }
 0x452   :  { %630 = vtanh.f32 %v282_v2 }
 0x458   :  { %v631_v3 = vpop.eup %630 }
 0x459   :  { %583 = vmatmul.msk.f32.vlgmr.msra.gmra.mxu0 %vm41_vm0, %v631_v3 }
 0x4d6   :  { %v304_v5 = vpop.f32.mrf.mxu0 }
 0x4d7   :  { %v307_v6 = vadd.f32 %v782_v4, %v304_v5 }
 0x4d9   :  { %632 = vtanh.f32 %v307_v6 }
 0x4df   :  { %v633_v9 = vpop.eup %632 }
 0x4e0   :  { %584 = vmatmul.msk.f32.vlgmr.msra.gmra.mxu1 %vm41_vm0, %v633_v9  ;;  %v309_v10 = vmul.f32 %v633_v9, %v788_v7 }
 0x4e2   :  { %v310_v11 = vadd.f32 %v793_v8, %v309_v10 }
 0x4e4   :  { %v312_v12 = vsel %vm311_vm1, %v310_v11, 0.0 }
 0x4e5   :  { %313 = vadd.xlane.f32.xlu0 %v312_v12 }
 0x558   :  { %v314_v56 = vpop.xlane.xlu0 %313 }
 0x55d   :  { %v335_v13 = vpop.f32.mrf.mxu1 }
 0x55e   :  { %v338_v14 = vadd.f32 %v782_v4, %v335_v13 }
 0x560   :  { %634 = vtanh.f32 %v338_v14 }
 0x566   :  { %v635_v15 = vpop.eup %634 }
 0x567   :  { %585 = vmatmul.msk.f32.vlgmr.msra.gmra.mxu2 %vm41_vm0, %v635_v15  ;;  %v340_v16 = vmul.f32 %v635_v15, %v788_v7 }
 0x569   :  { %v341_v17 = vadd.f32 %v793_v8, %v340_v16 }
 0x56b   :  { %v342_v18 = vsel %vm311_vm1, %v341_v17, 0.0 }
 0x56c   :  { %343 = vadd.xlane.f32.xlu1 %v342_v18 }
 0x5df   :  { %v344_v57 = vpop.xlane.xlu1 %343 }
 0x5e0   :  { %v526_v60 = vsel %vm525_vm2, %v314_v56, %v344_v57 }
 0x5ea   :  { %v365_v19 = vpop.f32.mrf.mxu2 }
 0x5eb   :  { %v368_v20 = vadd.f32 %v782_v4, %v365_v19 }
 0x5ed   :  { %636 = vtanh.f32 %v368_v20 }
 0x5f3   :  { %v637_v21 = vpop.eup %636 }
 0x5f4   :  { %586 = vmatmul.msk.f32.vlgmr.msra.gmra.mxu3 %vm41_vm0, %v637_v21  ;;  %v370_v22 = vmul.f32 %v637_v21, %v788_v7 }
 0x5f6   :  { %v371_v23 = vadd.f32 %v793_v8, %v370_v22 }
 0x5f8   :  { %v372_v24 = vsel %vm311_vm1, %v371_v23, 0.0 }
 0x5f9   :  { %373 = vadd.xlane.f32.xlu2 %v372_v24 }
 0x66c   :  { %v374_v55 = vpop.xlane.xlu2 %373 }
 0x66d   :  { %v528_v61 = vsel %vm527_vm3, %v526_v60, %v374_v55 }
 0x677   :  { %v395_v25 = vpop.f32.mrf.mxu3 }
 0x678   :  { %v398_v26 = vadd.f32 %v782_v4, %v395_v25 }
 0x67a   :  { %638 = vtanh.f32 %v398_v26 }
 0x680   :  { %v639_v27 = vpop.eup %638 }
 0x681   :  { %587 = vmatmul.msk.f32.vlgmr.msrb.gmra.mxu0 %vm41_vm0, %v639_v27  ;;  %v400_v28 = vmul.f32 %v639_v27, %v788_v7 }
 0x683   :  { %v401_v29 = vadd.f32 %v793_v8, %v400_v28 }
 0x685   :  { %v402_v30 = vsel %vm311_vm1, %v401_v29, 0.0 }
 0x686   :  { %403 = vadd.xlane.f32.xlu2 %v402_v30 }
 0x6f9   :  { %v404_v58 = vpop.xlane.xlu2 %403 }
 0x6fa   :  { %v530_v63 = vsel %vm529_vm4, %v528_v61, %v404_v58 }
 0x6fe   :  { %v425_v31 = vpop.f32.mrf.mxu0 }
 0x6ff   :  { %v428_v32 = vadd.f32 %v782_v4, %v425_v31 }
 0x701   :  { %640 = vtanh.f32 %v428_v32 }
 0x707   :  { %v641_v33 = vpop.eup %640 }
 0x708   :  { %588 = vmatmul.msk.f32.vlgmr.msrb.gmra.mxu1 %vm41_vm0, %v641_v33  ;;  %v430_v34 = vmul.f32 %v641_v33, %v788_v7 }
 0x70a   :  { %v431_v35 = vadd.f32 %v793_v8, %v430_v34 }
 0x70c   :  { %v432_v36 = vsel %vm311_vm1, %v431_v35, 0.0 }
 0x70d   :  { %433 = vadd.xlane.f32.xlu0 %v432_v36 }
 0x780   :  { %v434_v59 = vpop.xlane.xlu0 %433 }
 0x781   :  { %v532_v1 = vsel %vm531_vm5, %v530_v63, %v434_v59 }
 0x785   :  { %v455_v37 = vpop.f32.mrf.mxu1 }
 0x786   :  { %v458_v38 = vadd.f32 %v782_v4, %v455_v37 }
 0x788   :  { %642 = vtanh.f32 %v458_v38 }
 0x78e   :  { %v643_v39 = vpop.eup %642 }
 0x78f   :  { %589 = vmatmul.msk.f32.vlgmr.msrb.gmra.mxu2 %vm41_vm0, %v643_v39  ;;  %v460_v40 = vmul.f32 %v643_v39, %v788_v7 }
 0x791   :  { %v461_v41 = vadd.f32 %v793_v8, %v460_v40 }
 0x793   :  { %v462_v42 = vsel %vm311_vm1, %v461_v41, 0.0 }
 0x794   :  { %463 = vadd.xlane.f32.xlu1 %v462_v42 }
 0x807   :  { %v464_v62 = vpop.xlane.xlu1 %463 }
 0x808   :  { %v534_v2 = vsel %vm533_vm6, %v532_v1, %v464_v62 }
 0x812   :  { %v485_v43 = vpop.f32.mrf.mxu2 }
 0x813   :  { %v488_v44 = vadd.f32 %v782_v4, %v485_v43 }
 0x815   :  { %644 = vtanh.f32 %v488_v44 }
 0x81b   :  { %v645_v45 = vpop.eup %644 }
 0x81c   :  { %590 = vmatmul.msk.f32.vlgmr.msrb.gmra.mxu3 %vm41_vm0, %v645_v45  ;;  %v490_v46 = vmul.f32 %v645_v45, %v788_v7 }
 0x81e   :  { %v491_v47 = vadd.f32 %v793_v8, %v490_v46 }
 0x820   :  { %v492_v48 = vsel %vm311_vm1, %v491_v47, 0.0 }
 0x821   :  { %493 = vadd.xlane.f32.xlu2 %v492_v48 }
 0x894   :  { %v494_v0 = vpop.xlane.xlu2 %493 }
 0x895   :  { %v536_v3 = vsel %vm535_vm7, %v534_v2, %v494_v0 }
 0x89f   :  { %v515_v49 = vpop.f32.mrf.mxu3 }
 0x8a0   :  { %v518_v50 = vadd.f32 %v782_v4, %v515_v49 }
 0x8a2   :  { %646 = vtanh.f32 %v518_v50 }
 0x8a8   :  { %v647_v51 = vpop.eup %646 }
 0x8a9   :  { %v520_v52 = vmul.f32 %v647_v51, %v788_v7 }
 0x8ab   :  { %v521_v53 = vadd.f32 %v793_v8, %v520_v52 }
 0x8ad   :  { %v522_v54 = vsel %vm311_vm1, %v521_v53, 0.0 }
 0x8ae   :  { %523 = vadd.xlane.f32.xlu0 %v522_v54 }
 0x921   :  { %v524_v4 = vpop.xlane.xlu0 %523 }
 0x922   :  { %v538_v5 = vsel %vm537_vm8, %v536_v3, %v524_v4 }
 0x923   :  { %v591_v6 = vmul.f32 -1.442695, %v538_v5 }
 0x925   :  { %648 = vpow2.f32 %v591_v6 }
 0x92b   :  { %v649_v7 = vpop.eup %648 }
 0x92c   :  { %v542_v8 = vadd.f32 1.0, %v649_v7 }
 0x92e   :  { %650 = vrcp.f32 %v542_v8  ;;  %v554_v12 = vand.u32 2147483648, %v542_v8  ;;  %v552_v14 = vand.u32 2147483647, %v542_v8  ;;  %vm548_vm10 = vweird.f32 %v542_v8 }
 0x930   :  { %v555_v16 = vor.u32 1.1754944e-38, %v554_v12  ;;  %vm553_vm13 = vcmp.eq.f32.partialorder %v552_v14, 8.507059e+37 }
 0x934   :  { %v651_v9 = vpop.eup %650 }
 0x935   :  { %v544_v10 = vmul.f32 %v651_v9, %v542_v8  ;;  %vm549_vm9 = vweird.f32 %v651_v9 }
 0x936   :  { %vm550_vm11 = vmor %vm548_vm10, %vm549_vm9 }
 0x937   :  { %v545_v11 = vsub.f32 1.0, %v544_v10 }
 0x939   :  { %v546_v13 = vmul.f32 %v651_v9, %v545_v11 }
 0x93b   :  { %v547_v15 = vadd.f32 %v651_v9, %v546_v13 }
 0x93d   :  { %v551_v17 = vsel %vm550_vm11, %v651_v9, %v547_v15 }
 0x93e   :  { %v556_v18 = vsel %vm553_vm13, %v555_v16, %v551_v17 }
 0x93f   :  { %559 = vst.msk [vmem:[#allocation2] sm:$0x3] %vm558_vm12, %v556_v18 }
 0x940   :  { %570 = dma.vmem_to_hbm [thread:$0]  %s566_s11, 32, %s568_s14, [#allocation3]  }
 0x941   :  { %676 = dma.done.wait [#allocation3], 32  }
 0x942   :  { %677 = vsyncadd [#allocation3], 4294967264 }
 0x943   :  { %575 = vsyncpa [#allocation3], 1 }

</bundles_post_ra>
